<compile_context>
chip_gen: v7x
topology: tpu7x:2x2x1
jax: 0.10.0
libtpu: 0.0.40
codegen_flags: <defaults>
</compile_context>

<pallas_src>
import jax
import jax.numpy as jnp
import numpy as np
from jax import lax
from jax.experimental import pallas as pl
from jax.experimental.pallas import tpu as pltpu


def _yolo_decode_kernel(pred_ref, scale_ref, shift_ref, out_ref):
    """Decode one (batch, anchor, gg-tile) block: (attrs, T) logits -> boxes."""
    attrs, tile = shift_ref.shape

    # Sublane-row selector: rows 2,3 (w,h) use exp; every other row is a sigmoid.
    row = lax.broadcasted_iota(jnp.int32, (attrs, tile), 0)
    is_wh = jnp.logical_and(row >= 2, row < 4)

    # Upcast in-kernel; the HBM->VMEM DMA stays at the model's native dtype.
    p = pred_ref[0, 0].astype(jnp.float32)                  # (attrs, tile)

    # Single EUP transcendental per element: exp(p) on w/h rows, exp(-p) on
    # sigmoid rows followed by one reciprocal (1/(1+e) == sigmoid(p)).
    e = jnp.exp(jnp.where(is_wh, p, -p))
    val = jnp.where(is_wh, e, 1.0 / (1.0 + e))

    # Decode collapses to val * scale + shift; scale broadcasts along lanes
    # from an (attrs, 1) column, shift carries grid-cell offsets (*stride).
    out_ref[0, 0] = val * scale_ref[0] + shift_ref[...]


def _pick_gg_tile(gg, max_tile=1024):
    """Largest multiple of 128 (<= max_tile) dividing gg, else full gg."""
    if gg % 128 != 0:
        return gg
    for t in range(min(max_tile, gg), 127, -128):
        if gg % t == 0:
            return t
    return gg


def yolo_decode(prediction, anchors, num_classes, img_size):
    """YOLOVLoss.forward(prediction, targets=None) — Pallas TPU kernel path."""
    B, C, G, G2 = prediction.shape
    assert G == G2
    A = len(anchors)
    attrs = 5 + num_classes
    assert C == A * attrs
    stride = img_size // G
    gg = G * G
    tile = _pick_gg_tile(gg)
    n_tiles = gg // tile

    # Per-(anchor, attr-row) multiplicative scale as an (A, attrs, 1) column
    # (constant along the spatial axis -> broadcast along lanes in-kernel):
    # rows 0,1 (x,y) -> *stride ; rows 2,3 (w,h) -> *anchor
    # (== (anchor/stride)*stride in the reference) ; rows 4.. (conf,cls) -> *1.
    scale = np.ones((A, attrs, 1), np.float32)
    scale[:, 0:2, 0] = float(stride)
    for a, (aw, ah) in enumerate(anchors):
        scale[a, 2, 0] = float(aw)
        scale[a, 3, 0] = float(ah)

    # Additive shift: rows 0,1 carry the grid-cell offsets (already *stride);
    # flattened spatial index = gj*G + gi, so gi = idx % G, gj = idx // G.
    idx = np.arange(gg)
    shift = np.zeros((attrs, gg), np.float32)
    shift[0, :] = (idx % G).astype(np.float32) * float(stride)   # grid_x (gi)
    shift[1, :] = (idx // G).astype(np.float32) * float(stride)  # grid_y (gj)

    scale = jnp.asarray(scale)
    shift = jnp.asarray(shift)

    # Native-dtype input; only a layout-preserving reshape on the wrapper side.
    pred = prediction.reshape(B, A, attrs, gg)

    elems = B * A * attrs * gg
    cost = pl.CostEstimate(
        flops=6 * elems,
        transcendentals=elems,
        bytes_accessed=(pred.size * pred.dtype.itemsize   # input read
                        + elems * 4                        # f32 output write
                        + scale.size * 4 + shift.size * 4),
    )

    out = pl.pallas_call(
        _yolo_decode_kernel,
        out_shape=jax.ShapeDtypeStruct((B, A, attrs, gg), jnp.float32),
        grid=(B, A, n_tiles),
        in_specs=[
            pl.BlockSpec((1, 1, attrs, tile), lambda b, a, t: (b, a, 0, t)),
            # Tiny per-anchor scale column; re-used across the gg tiles.
            pl.BlockSpec((1, attrs, 1), lambda b, a, t: (a, 0, 0)),
            # Grid-cell offsets; gg-tiled, independent of batch/anchor.
            pl.BlockSpec((attrs, tile), lambda b, a, t: (0, t)),
        ],
        out_specs=pl.BlockSpec((1, 1, attrs, tile), lambda b, a, t: (b, a, 0, t)),
        compiler_params=pltpu.CompilerParams(
            dimension_semantics=("parallel", "parallel", "parallel")),
        cost_estimate=cost,
    )(pred, scale, shift)

    # Kernel output stays lane-dense (gg minor).  The attrs-minor layout the
    # PyTorch module returns is one cheap XLA transpose + a pure dim-merge,
    # matching the (anchor, gj, gi) flatten order.
    return jnp.transpose(out, (0, 1, 3, 2)).reshape(B, A * gg, attrs)


def yolo_decode_ref(prediction, anchors, num_classes, img_size):
    """Pure-JAX reference mirroring the PyTorch forward (targets=None)."""
    B, C, G, _ = prediction.shape
    A = len(anchors)
    attrs = 5 + num_classes
    stride = img_size // G
    p = prediction.reshape(B, A, attrs, G, G).transpose(0, 1, 3, 4, 2)
    x = jax.nn.sigmoid(p[..., 0])
    y = jax.nn.sigmoid(p[..., 1])
    w = p[..., 2]
    h = p[..., 3]
    conf = jax.nn.sigmoid(p[..., 4])
    cls = jax.nn.sigmoid(p[..., 5:])
    gx = jnp.arange(G, dtype=jnp.float32)[None, None, None, :]   # over gi
    gy = jnp.arange(G, dtype=jnp.float32)[None, None, :, None]   # over gj
    aw = jnp.array([a[0] / stride for a in anchors],
                   jnp.float32)[None, :, None, None]
    ah = jnp.array([a[1] / stride for a in anchors],
                   jnp.float32)[None, :, None, None]
    bx = (x + gx) * stride
    by = (y + gy) * stride
    bw = jnp.exp(w) * aw * stride
    bh = jnp.exp(h) * ah * stride
    boxes = jnp.stack([bx, by, bw, bh], axis=-1)
    out = jnp.concatenate([boxes, conf[..., None], cls], axis=-1)
    return out.reshape(B, A * G * G, attrs)


if __name__ == "__main__":
    key = jax.random.PRNGKey(0)

    # Small, module-consistent shapes:
    #   batch=2, num_anchors=3, num_classes=3 -> attrs = 5+3 = 8,
    #   channels = 3*8 = 24, grid=16, img_size=64 (stride 4).
    B = 2
    num_classes = 3
    G = 16
    img_size = 64
    anchors = [(6.0, 8.0), (10.0, 14.0), (18.0, 26.0)]
    A = len(anchors)
    attrs = 5 + num_classes

    prediction = jax.random.normal(key, (B, A * attrs, G, G), dtype=jnp.float32)

    # f32 path.
    out = yolo_decode(prediction, anchors, num_classes, img_size)
    out = jax.block_until_ready(out)
    ref = yolo_decode_ref(prediction, anchors, num_classes, img_size)
    assert out.shape == (B, A * G * G, attrs)
    np.testing.assert_allclose(np.asarray(out), np.asarray(ref),
                               rtol=2e-5, atol=2e-5)

    # bf16 conv-output path: no wrapper-side cast, kernel upcasts the DMAed tile.
    pred_bf16 = prediction.astype(jnp.bfloat16)
    out_bf16 = jax.block_until_ready(
        yolo_decode(pred_bf16, anchors, num_classes, img_size))
    ref_bf16 = yolo_decode_ref(pred_bf16.astype(jnp.float32), anchors,
                               num_classes, img_size)
    np.testing.assert_allclose(np.asarray(out_bf16), np.asarray(ref_bf16),
                               rtol=1e-3, atol=1e-3)

    print("KERNEL_OK")
</pallas_src>

<mosaic_0001>
module attributes {stable_mosaic.version = 11 : i64} {
  func.func @_yolo_decode_kernel(%arg0: i32, %arg1: i32, %arg2: i32, %arg3: memref<1x1x8x256xf32, #tpu.memory_space<vmem>>, %arg4: memref<1x8x1xf32, #tpu.memory_space<vmem>>, %arg5: memref<8x256xf32, #tpu.memory_space<vmem>>, %arg6: memref<1x1x8x256xf32, #tpu.memory_space<vmem>>) attributes {dimension_semantics = [#tpu.dimension_semantics<parallel>, #tpu.dimension_semantics<parallel>, #tpu.dimension_semantics<parallel>], iteration_bounds = array<i64: 2, 3, 1>, scalar_prefetch = 0 : i64, scratch_operands = 0 : i64, tpu.core_type = #tpu.core_type<tc>, window_params = [{transform_indices = @transform_0, window_bounds = array<i64: 1, 1, 8, 256>}, {transform_indices = @transform_1, window_bounds = array<i64: 1, 8, 1>}, {transform_indices = @transform_2, window_bounds = array<i64: 8, 256>}, {transform_indices = @transform_3, window_bounds = array<i64: 1, 1, 8, 256>}]} {
    %0 = tpu.iota {dimensions = array<i32: 0>} : vector<8x256xi32>
    %c2_i32 = arith.constant 2 : i32
    %1 = vector.broadcast %c2_i32 : i32 to vector<8x256xi32>
    %2 = arith.cmpi sge, %0, %1 : vector<8x256xi32>
    %c4_i32 = arith.constant 4 : i32
    %3 = vector.broadcast %c4_i32 : i32 to vector<8x256xi32>
    %4 = arith.cmpi slt, %0, %3 : vector<8x256xi32>
    %5 = arith.andi %2, %4 : vector<8x256xi1>
    %c0 = arith.constant 0 : index
    %c0_0 = arith.constant 0 : index
    %c0_1 = arith.constant 0 : index
    %c0_2 = arith.constant 0 : index
    %6 = vector.load %arg3[%c0, %c0_0, %c0_1, %c0_2] : memref<1x1x8x256xf32, #tpu.memory_space<vmem>>, vector<1x1x8x256xf32>
    %7 = vector.shape_cast %6 : vector<1x1x8x256xf32> to vector<8x256xf32>
    %cst = arith.constant 0.000000e+00 : f32
    %8 = vector.broadcast %cst : f32 to vector<8x256xf32>
    %9 = arith.subf %8, %7 : vector<8x256xf32>
    %10 = arith.select %5, %7, %9 : vector<8x256xi1>, vector<8x256xf32>
    %11 = math.exp %10 : vector<8x256xf32>
    %cst_3 = arith.constant 1.000000e+00 : f32
    %12 = vector.broadcast %cst_3 : f32 to vector<8x256xf32>
    %13 = arith.addf %12, %11 : vector<8x256xf32>
    %cst_4 = arith.constant 1.000000e+00 : f32
    %14 = vector.broadcast %cst_4 : f32 to vector<8x256xf32>
    %15 = arith.divf %14, %13 : vector<8x256xf32>
    %16 = arith.select %5, %11, %15 : vector<8x256xi1>, vector<8x256xf32>
    %c0_5 = arith.constant 0 : index
    %c0_6 = arith.constant 0 : index
    %c0_7 = arith.constant 0 : index
    %17 = vector.load %arg4[%c0_5, %c0_6, %c0_7] : memref<1x8x1xf32, #tpu.memory_space<vmem>>, vector<1x8x1xf32>
    %18 = vector.shape_cast %17 : vector<1x8x1xf32> to vector<8x1xf32>
    %19 = vector.broadcast %18 : vector<8x1xf32> to vector<8x256xf32>
    %20 = arith.mulf %16, %19 : vector<8x256xf32>
    %c0_8 = arith.constant 0 : index
    %c0_9 = arith.constant 0 : index
    %21 = vector.load %arg5[%c0_8, %c0_9] : memref<8x256xf32, #tpu.memory_space<vmem>>, vector<8x256xf32>
    %22 = arith.addf %20, %21 : vector<8x256xf32>
    %c0_10 = arith.constant 0 : index
    %c0_11 = arith.constant 0 : index
    %c0_12 = arith.constant 0 : index
    %c0_13 = arith.constant 0 : index
    %23 = vector.load %arg6[%c0_10, %c0_11, %c0_12, %c0_13] : memref<1x1x8x256xf32, #tpu.memory_space<vmem>>, vector<1x1x8x256xf32>
    %24 = vector.shape_cast %23 : vector<1x1x8x256xf32> to vector<8x256xf32>
    %25 = vector.shape_cast %22 : vector<8x256xf32> to vector<1x1x8x256xf32>
    tpu.vector_store %arg6[%c0_10, %c0_11, %c0_12, %c0_13], %25 {strides = array<i32>} : memref<1x1x8x256xf32, #tpu.memory_space<vmem>>, vector<1x1x8x256xf32>,
    return
  }
  func.func @transform_0(%arg0: i32, %arg1: i32, %arg2: i32) -> (i32, i32, i32, i32) {
    %c0_i32 = arith.constant 0 : i32
    %c0_i32_0 = arith.constant 0 : i32
    return %arg0, %arg1, %c0_i32, %arg2 : i32, i32, i32, i32
  }
  func.func @transform_1(%arg0: i32, %arg1: i32, %arg2: i32) -> (i32, i32, i32) {
    %c0_i32 = arith.constant 0 : i32
    %c0_i32_0 = arith.constant 0 : i32
    %c0_i32_1 = arith.constant 0 : i32
    return %arg1, %c0_i32, %c0_i32_0 : i32, i32, i32
  }
  func.func @transform_2(%arg0: i32, %arg1: i32, %arg2: i32) -> (i32, i32) {
    %c0_i32 = arith.constant 0 : i32
    %c0_i32_0 = arith.constant 0 : i32
    return %c0_i32, %arg2 : i32, i32
  }
  func.func @transform_3(%arg0: i32, %arg1: i32, %arg2: i32) -> (i32, i32, i32, i32) {
    %c0_i32 = arith.constant 0 : i32
    %c0_i32_0 = arith.constant 0 : i32
    return %arg0, %arg1, %c0_i32, %arg2 : i32, i32, i32, i32
  }
}

</mosaic_0001>

<bundles_post_ra>
// kernel: tpu_custom_call.1
= control target key start
LH: loop header
LB: loop body
LE: loop exit
PB: predicated region body
PF: predicated region fallthrough
CT: control target
= control target key end

     0   :  { %8 = vsyncpa [#allocation3], 0  ;;  %s917_s0 = inlined_call_operand.hbm [shape: f32[2,3,8,256], index: 0, kind: input, shape index: {}]   ;;  %s918_s1 = inlined_call_operand.vmem [shape: f32[3,8,1], index: 1, kind: input, shape index: {}]   ;;  %s919_s2 = inlined_call_operand.vmem [shape: f32[8,256], index: 2, kind: input, shape index: {}]   ;;  %s920_s3 = inlined_call_operand.hbm [shape: f32[2,3,8,256], index: 3, kind: output, shape index: {}]  }
   0x1   :  { %10 = vsyncpa [#allocation3 + $0x1], 0 }
   0x2   :  { %11 = vsyncpa [#allocation4], 0 }
   0x3   :  { %13 = vsyncpa [#allocation4 + $0x1], 0  ;;  %s696_s12 = smov 0   ;;  %s698_s13 = smov 0  }
   0x4   :  { %s700_s14 = smov 0   ;;  %s702_s15 = smov 0  }
   0x5   :  { %s704_s16 = smov 0   ;;  %s706_s17 = smov 0  }
   0x6   :  { %s708_s18 = smov 0   ;;  %s710_s19 = smov 0  }
   0x7 LB: > { %s436_s20 = sadd.s32 4294967295, %s671_s19   ;;  %s437_s21 = sadd.s32 4294967294, %s671_s19   ;;  %s671_s19 = sphi %s710_s19, %s19_s19   ;;  %s667_s18 = sphi %s708_s18, %s939_s18   ;;  %s663_s17 = sphi %s706_s17, %s938_s17   ;;  %s659_s16 = sphi %s704_s16, %s937_s16   ;;  %s655_s15 = sphi %s702_s15, %s936_s15   ;;  %s651_s14 = sphi %s700_s14, %s935_s14   ;;  %s647_s13 = sphi %s698_s13, %s934_s13   ;;  %s643_s12 = sphi %s696_s12, %s933_s12  }
   0x8   : > { %s34_s22 = sadd.s32 1, %s663_s17  ;;  %s38_s23 = sadd.s32 1, %s667_s18 }
   0x9   : > { %p36_p0 = scmp.ge.s32.totalorder %s34_s22, 3  ;;  %s49_s24 = sadd.s32 1, %s651_s14 }
   0xa   : > { %p56_p1 = scmp.ne.s32.totalorder %s651_s14, %s647_s13  ;;  %p57_p2 = scmp.eq.s32.totalorder %s671_s19, 0 }
   0xb   : > { %s941_s22 = smov (%p36_p0, %s34_s22), 0  ;;  %s943_s23 = smov (!%p36_p0, %s38_s23), %s667_s18 }
   0xc   : > { %s43_s25 = ssub.s32 %s663_s17, %s941_s22  ;;  %p749_p3 = por %p57_p2, %p56_p1 }
   0xd   : > { %p40_p4 = scmp.ge.s32.totalorder %s943_s23, 2  ;;  %p62_p5 = scmp.ne.s32.totalorder %s647_s13, %s643_s12 }
   0xe   : > { %p63_p6 = scmp.eq.s32.totalorder %s436_s20, 0  ;;  %p142_p7 = scmp.eq.s32.totalorder %s436_s20, 5 }
   0xf   : > { %s945_s23 = smov (%p40_p4, %s943_s23), 0  ;;  %p148_p10 = scmp.eq.s32.totalorder %s437_s21, 5 }
  0x10   : > { %p757_p8 = por %p63_p6, %p62_p5  ;;  %p761_p9 = por %p142_p7, %p56_p1 }
  0x11   : > { %s42_s29 = ssub.s32 %s667_s18, %s945_s23  ;;  %p767_p12 = por %p148_p10, %p62_p5 }
  0x12   : > { %s924_s28 = scalar_select %p761_p9, 1, 0 }
  0x13   : > { %s44_s30 = sor.u32 %s43_s25, %s42_s29  ;;  %p467_p13 = scmp.lt.s32.totalorder %s671_s19, 6 }
  0x14   : > { %p47_p11 = scmp.eq.s32.totalorder %s44_s30, 0  ;;  %s177_s5 = sand.u32 1, %s651_s14  }
  0x15   : > { %s925_s4 = scalar_select %p767_p12, 1, 0 }
  0x16   : > { %s774_s6 = scalar_select %p47_p11, %s651_s14, %s49_s24  }
  0x17   : > { %s441_s7 = sshll.u32 %s177_s5, 4  ;;  %s442_s8 = sshll.u32 %s663_s17, 1 }
  0x18   : > { %s453_s9 = smul.u32 6, %s667_s18  ;;  %s181_s10 = scalar_lea.vmem [#allocation2], %s441_s7 }
  0x19   : > { %s193_s11 = sshll.u32 %s181_s10, 4  ;;  %p782_p0 = pnand %p467_p13, %p749_p3  ;;  %s778_s11 = int_to_ptr.vmem [resolvable:$true] %s193_s11 }
  0x1a   : > { %s189_s21 = sadd.s32 %s453_s9, %s442_s8  ;;  %s178_s26 = scalar_lea.sflag [#allocation3], %s177_s5 }
  0x1b   : > { %s443_s25 = sshll.u32 %s189_s21, 7  ;;  %p545_p4 = pneg %p782_p0 }
  0x1c   : > { %s790_s30 = scalar_lea.hbm %s917_s0, %s443_s25  ;;  %s548_s10 = scalar_lea.hbm %s917_s0, 1536 }
  0x1d   : > { %s543_s7 = scalar_lea.hbm %s790_s30, 256  ;;  %p549_p7 = scmp.lt.u32.totalorder %s790_s30, %s917_s0 }
  0x1e   : > { %p544_p3 = scmp.ne.s32.totalorder %s790_s30, %s543_s7  ;;  %p550_p10 = scmp.lt.u32.totalorder %s548_s10, %s543_s7 }
  0x1f   : > { %p552_p13 = scmp.lt.u32.totalorder %s543_s7, %s790_s30 }
  0x20   : > { %p546_p5 = pnand %p545_p4, %p544_p3  ;;  %p551_p11 = por %p550_p10, %p549_p7 }
  0x22   : > { %p547_p6 = pneg %p546_p5  ;;  %p553_p1 = por %p552_p13, %p551_p11 }
  0x24   : > { %p554_p2 = pnand %p553_p1, %p547_p6 }
  0x26   : > { %557 = shalt.err (!%p554_p2)
}
  0x27   : > { %s558_s5 = scalar_lea.vmem %s778_s11, 256  ;;  %s673_s29 = smov [#allocation2]  }
  0x28   : > { %p559_p3 = scmp.ne.s32.totalorder %s778_s11, %s558_s5  ;;  %s563_s24 = sshll.u32 %s673_s29, 4  ;;  %s564_s24 = int_to_ptr.vmem [resolvable:$false] %s563_s24 }
  0x29   : > { %s565_s8 = scalar_lea.vmem %s564_s24, 512  ;;  %p566_p9 = scmp.lt.s32.totalorder %s778_s11, %s564_s24 }
  0x2a   : > { %p561_p5 = pnand %p559_p3, %p545_p4  ;;  %p567_p7 = scmp.lt.s32.totalorder %s565_s8, %s558_s5 }
  0x2c   : > { %p562_p12 = pneg %p561_p5  ;;  %p568_p10 = por %p567_p7, %p566_p9 }
  0x2e   : > { %p569_p11 = pnand %p568_p10, %p562_p12 }
  0x30   : > { %572 = shalt.err (!%p569_p11)
}
  0x31   : > { %462 = dma.hbm_to_vmem [thread:$0]  (!%p782_p0), %s790_s30, 256, %s778_s11, %s178_s26  }
  0x32   : > { %p927_p1 = scmp.lt.s32.totalorder %s671_s19, 7  ;;  %p928_p2 = scmp.ge.s32.totalorder %s671_s19, 1 }
  0x34   : > { %p206_p4 = pnand %p928_p2, %p927_p1 }
  0x35   : > { %s823_s7 = sand.u32 (!%p206_p4), 1, %s647_s13  }
  0x36   : > { %209 = sbr.rel (%p206_p4) target bundleno = 215 (0xd7), region = 32  ;;  %s445_s9 = sshll.u32 (!%p206_p4), %s823_s7, 4 }
  0x37   : > { %s212_s10 = scalar_lea.sflag (!%p206_p4), [#allocation3], %s823_s7  ;;  %s215_s20 = scalar_lea.vmem (!%p206_p4), [#allocation2], %s445_s9 }
  0x3d   : > { %634 = dma.done.wait (%p757_p8), %s212_s10, 256  }
  0x3e   : > { %636 = vsyncadd (%p757_p8), %s212_s10, 4294967040  ;;  %p248_p9 = scmp.lt.s32.totalorder %s655_s15, 2  ;;  %v674_v0 = vmov 0   ;;  %v259_v2 = vlaneseq  ;;  %v264_v4 = vld [vmem:[%s215_s20] sm:$0xff]  ;;  %v265_v5 = vld [vmem:[%s215_s20 + $0x8] sm:$0xff]  ;;  %s454_s27 = smul.u32 6, %s659_s16 }
  0x3f   : > { %534 = vset.pattern.permute.xlu0 %v674_v0  ;;  %v266_v6 = vsub.f32 0.0, %v264_v4  ;;  %v267_v8 = vsub.f32 0.0, %v265_v5  ;;  %s449_s5 = sshll.u32 %s655_s15, 1  ;;  %v290_v21 = vld [vmem:[%s919_s2] sm:$0xff]  ;;  %v291_v22 = vld [vmem:[%s919_s2 + $0x8] sm:$0xff]  ;;  %s246_s16 = scalar_lea.vmem [#allocation5], %s445_s9 }
  0x40   : > { %s249_s11 = scalar_select %p248_p9, %s655_s15, 2  ;;  %v260_v3 = vshrl.u32 %v259_v2, 7 }
  0x41   : > { %s311_s29 = sadd.s32 %s454_s27, %s449_s5  ;;  %p931_p12 = scmp.ne.s32.totalorder %s924_s28, 0 }
  0x42   : > { %s447_s30 = sshll.u32 %s249_s11, 3  ;;  %vm261_vm0 = vcmp.ge.s32.totalorder %v260_v3, 2  ;;  %vm262_vm1 = vcmp.lt.s32.totalorder %v260_v3, 4  ;;  %s450_s15 = sshll.u32 %s311_s29, 7 }
  0x43   : > { %s251_s25 = scalar_lea.vmem %s918_s1, %s447_s30  ;;  %vm838_vm2 = vmand %vm261_vm0, %vm262_vm1  ;;  %s315_s11 = sshll.u32 %s246_s16, 4  ;;  %s865_s11 = int_to_ptr.vmem [resolvable:$true] %s315_s11 }
  0x44   : > { %v282_v1 = vld [vmem:[%s251_s25] sm:$0xff]  ;;  %v268_v9 = vsel %vm838_vm2, %v264_v4, %v266_v6  ;;  %v269_v10 = vsel %vm838_vm2, %v265_v5, %v267_v8  ;;  %s863_s21 = scalar_lea.hbm %s920_s3, %s450_s15  ;;  %s297_s25 = scalar_lea.sflag [#allocation4], %s823_s7 }
  0x45   : > { %285 = vperm.xlu0 %534, %v282_v1   ;;  %v270_v11 = vmul.f32 1.442695, %v268_v9  ;;  %v272_v12 = vmul.f32 1.442695, %v269_v10  ;;  %s573_s27 = scalar_lea.vmem %s865_s11, 256  ;;  %s675_s9 = smov [#allocation5]  }
  0x46   : > { %p574_p8 = scmp.ne.s32.totalorder %s865_s11, %s573_s27  ;;  %s577_s5 = sshll.u32 %s675_s9, 4  ;;  %s578_s5 = int_to_ptr.vmem [resolvable:$false] %s577_s5 }
  0x47   : > { %535 = vpow2.f32 %v270_v11  ;;  %s579_s29 = scalar_lea.vmem %s578_s5, 512  ;;  %p580_p13 = scmp.lt.s32.totalorder %s865_s11, %s578_s5 }
  0x48   : > { %537 = vpow2.f32 %v272_v12  ;;  %p575_p0 = pnand %p574_p8, %p931_p12  ;;  %p581_p3 = scmp.lt.s32.totalorder %s579_s29, %s573_s27 }
  0x4a   : > { %p576_p6 = pneg %p575_p0  ;;  %p582_p5 = por %p581_p3, %p580_p13 }
  0x4c   : > { %p583_p7 = pnand %p582_p5, %p576_p6 }
  0x51   : > { %v536_v13 = vpop.eup %535 }
  0x52   : > { %v538_v14 = vpop.eup %537  ;;  %v274_v15 = vadd.f32 1.0, %v536_v13 }
  0x53   : > { %v275_v16 = vadd.f32 1.0, %v538_v14 }
  0x54   : > { %539 = vrcp.f32 %v274_v15 }
  0x55   : > { %541 = vrcp.f32 %v275_v16 }
  0x5e   : > { %v540_v17 = vpop.eup %539 }
  0x5f   : > { %v542_v18 = vpop.eup %541  ;;  %v280_v19 = vsel %vm838_vm2, %v536_v13, %v540_v17 }
  0x60   : > { %v281_v20 = vsel %vm838_vm2, %v538_v14, %v542_v18 }
  0xc4   : > { %v286_v23 = vpop.permute.xlu0 %285 }
  0xc5   : > { %v288_v24 = vmul.f32 %v286_v23, %v280_v19  ;;  %v289_v25 = vmul.f32 %v286_v23, %v281_v20 }
  0xc7   : > { %v292_v26 = vadd.f32 %v290_v21, %v288_v24  ;;  %v293_v27 = vadd.f32 %v291_v22, %v289_v25 }
  0xc9   : > { %294 = vst [vmem:[%s246_s16] sm:$0xff] %v292_v26  ;;  %295 = vst [vmem:[%s246_s16 + $0x8] sm:$0xff] %v293_v27 }
  0xca   : > { %586 = shalt.err (!%p583_p7)
}
  0xcb   : > { %s587_s7 = scalar_lea.hbm %s863_s21, 256  ;;  %s591_s10 = scalar_lea.hbm %s920_s3, 1536 }
  0xcc   : > { %p588_p10 = scmp.ne.s32.totalorder %s863_s21, %s587_s7  ;;  %p592_p2 = scmp.lt.u32.totalorder %s863_s21, %s920_s3 }
  0xcd   : > { %p593_p4 = scmp.lt.u32.totalorder %s591_s10, %s587_s7  ;;  %p595_p8 = scmp.lt.u32.totalorder %s587_s7, %s863_s21 }
  0xce   : > { %p589_p11 = pnand %p588_p10, %p931_p12 }
  0xcf   : > { %p594_p9 = por %p593_p4, %p592_p2 }
  0xd0   : > { %p590_p1 = pneg %p589_p11 }
  0xd1   : > { %p596_p0 = por %p595_p8, %p594_p9 }
  0xd3   : > { %p597_p6 = pnand %p596_p0, %p590_p1 }
  0xd5   : > { %600 = shalt.err (!%p597_p6)
}
  0xd6   : > { %457 = dma.vmem_to_hbm [thread:$0]  (%p931_p12), %s865_s11, 256, %s863_s21, %s297_s25  }
  0xd7 PF: > { %p468_p13 = scmp.ge.s32.totalorder %s671_s19, 2  ;;  %s327_s16 = sand.u32 1, %s643_s12  }
  0xd8   : > { %p932_p3 = scmp.ne.s32.totalorder %s925_s4, 0  ;;  %s328_s30 = scalar_lea.sflag [#allocation4], %s327_s16 }
  0xda   : > { %p464_p5 = pnand %p468_p13, %p932_p3 }
  0xdc   : > { %638 = dma.done.wait (!%p464_p5), %s328_s30, 256  }
  0xdd   : > { %640 = vsyncadd (!%p464_p5), %s328_s30, 4294967040  ;;  %s19_s19 = sadd.s32 1, %s671_s19   ;;  %s933_s12 = smov %s647_s13 }
  0xde   : > { %p16_p7 = scmp.ge.s32.totalorder %s19_s19, 8   ;;  %s934_s13 = smov %s651_s14 }
  0xdf   : > { %s935_s14 = smov %s774_s6  ;;  %s936_s15 = smov %s663_s17 }
  0xe0   : > { %s937_s16 = smov %s667_s18  ;;  %s938_s17 = smov %s941_s22 }
  0xe1   : > { %s939_s18 = smov %s945_s23  ;;  %18 = sbr.rel (!%p16_p7) target bundleno = 7 (0x7), region = 83 }
  0xe8   :  { %333 = vsyncpa [#allocation3], 1 }
  0xe9   :  { %335 = vsyncpa [#allocation3 + $0x1], 1 }
  0xea   :  { %336 = vsyncpa [#allocation4], 1 }
  0xeb   :  { %338 = vsyncpa [#allocation4 + $0x1], 1 }

</bundles_post_ra>
